<compile_context>
chip_gen: v6e
topology: v6e:2x2x1
jax: 0.10.0
libtpu: 0.0.40
codegen_flags: <defaults>
</compile_context>

<pallas_src>
import math

import jax
import jax.numpy as jnp
from jax.experimental import pallas as pl
from jax.experimental.pallas import tpu as pltpu


def _round_up(x, m):
    return ((x + m - 1) // m) * m


# ---------------------------------------------------------------------------
# Host-side weight repacking: conv -> banded matmuls over the (rows, W*C) slab
# ---------------------------------------------------------------------------
def _band_weights(w_hwio, W):
    """(KH,KW,Cin,Cout) conv weights -> (KH, W*Cin, W*Cout) banded matrices.

    B[kh, w_in*Cin+ci, w_out*Cout+co] = w[kh, w_in-w_out+p, ci, co] (0 outside
    the kernel support), so a stride-1 'same' conv becomes
        out(row, :) = sum_kh  xpad[row - p + kh, :] @ B[kh]
    over the H-padded (rows, W*Cin) slab; kw taps and the W-border zero
    padding are folded into B.
    """
    KH, KW, Cin, Cout = w_hwio.shape
    p = (KW - 1) // 2
    w_in = jnp.arange(W)[:, None]                    # (W, 1)
    w_out = jnp.arange(W)[None, :]                   # (1, W)
    kw = w_in - w_out + p                            # (W, W)
    valid = (kw >= 0) & (kw < KW)
    kw_c = jnp.clip(kw, 0, KW - 1)
    bands = []
    for kh in range(KH):
        taps = w_hwio[kh][kw_c]                      # (W, W, Cin, Cout)
        taps = jnp.where(valid[:, :, None, None], taps, 0.0)
        bands.append(jnp.transpose(taps, (0, 2, 1, 3)).reshape(W * Cin, W * Cout))
    return jnp.stack(bands, axis=0)                  # (KH, W*Cin, W*Cout)


def _blockdiag_1x1(w_1x1, W):
    """(Cin, Cout) 1x1-conv weights -> (W*Cin, W*Cout) block-diagonal matrix."""
    Cin, Cout = w_1x1.shape
    eye = jnp.eye(W, dtype=w_1x1.dtype)
    B = eye[:, None, :, None] * w_1x1[None, :, None, :]   # (W, Cin, W, Cout)
    return B.reshape(W * Cin, W * Cout)


# ---------------------------------------------------------------------------
# Fused residual-block kernel: Nb batch elements per grid step, batch stacked
# along the matmul M axis.
# ---------------------------------------------------------------------------
def _make_fused_kernel(H, W, layer_geom, has_shortcut, Nb, mxu_dtype, out_dtype):
    """layer_geom: tuple of (K, cin, cout, top, SEG, M_out) per main-path conv
    (top/SEG/M_out are None for 1x1 layers)."""
    n_layers = len(layer_geom)

    def kernel(*refs):
        x_ref = refs[0]                              # (Nb, H, W*Cin0)
        wb = refs[1:1 + 2 * n_layers]                # interleaved (B_i, bias_i)
        pos = 1 + 2 * n_layers
        wsc_ref = refs[pos] if has_shortcut else None
        pos += int(has_shortcut)
        o_ref = refs[pos]                            # (Nb, H, W*CoutP)
        pad_refs = refs[pos + 1:]                    # H-padded VMEM scratches

        # Batch stacked along sublanes: (Nb*H, W*Cin0) f32 slab.
        x0 = x_ref[...].reshape(Nb * H, W * layer_geom[0][1]).astype(jnp.float32)
        cur = x0
        offs = [n * H for n in range(Nb)]            # row offset of element n
        pad_i = 0
        main = None
        for i, (K, cin, _cout, top, SEG, M_out) in enumerate(layer_geom):
            p = (K - 1) // 2
            b_row = wb[2 * i + 1][...]               # f32 (1, W*cout)
            if K > 1:
                xp = pad_refs[pad_i]                 # f32 (Nb*SEG, W*cin)
                pad_i += 1
                zero_halo = jnp.zeros((p, W * cin), xp.dtype)
                for n in range(Nb):
                    base = n * SEG
                    # Only the halo rows actually read for valid outputs are
                    # zeroed (review #3); rows beyond them only feed discarded
                    # accumulator rows.
                    xp[base + top - p:base + top, :] = zero_halo
                    xp[base + top + H:base + top + H + p, :] = zero_halo
                    xp[base + top:base + top + H, :] = (
                        cur[offs[n]:offs[n] + H, :].astype(xp.dtype))
                acc = None
                for kh in range(K):
                    r0 = top - p + kh
                    # acc[r] = conv output at scratch row top + r.
                    lhs = xp[r0:r0 + M_out, :].astype(mxu_dtype)
                    d = jnp.dot(lhs, wb[2 * i][kh],
                                preferred_element_type=jnp.float32)
                    acc = d if acc is None else acc + d
                offs = [n * SEG for n in range(Nb)]  # valid rows: [n*SEG, +H)
            else:                                    # 1x1 conv in the main path
                acc = jnp.dot(cur.astype(mxu_dtype), wb[2 * i][0],
                              preferred_element_type=jnp.float32)
            acc = acc + b_row                        # bias (f32)
            if i < n_layers - 1:
                cur = jnp.maximum(acc, 0.0)          # ReLU between convs
            else:
                main = acc                           # last conv: no ReLU here

        # Shortcut path + residual add + final ReLU, fused into the epilogue.
        if has_shortcut:
            sc = jnp.dot(x0.astype(mxu_dtype), wsc_ref[...],
                         preferred_element_type=jnp.float32)   # (Nb*H, W*CoutP)
        else:
            sc = x0                                  # identity (no Cout padding)
        for n in range(Nb):
            res = main[offs[n]:offs[n] + H, :] + sc[n * H:(n + 1) * H, :]
            o_ref[n] = jnp.maximum(res, 0.0).astype(out_dtype)   # lane-dense vst

    return kernel


# ---------------------------------------------------------------------------
# ResidualBlock: deterministic param init + forward (PyTorch semantics)
# ---------------------------------------------------------------------------
def init_residual_block_params(key, in_channels, channels, kernel_sizes):
    assert channels and kernel_sizes and len(channels) == len(kernel_sizes)
    assert all(k % 2 == 1 for k in kernel_sizes)
    params = {"main": [], "shortcut": None}
    cin = in_channels
    for cout, k in zip(channels, kernel_sizes):
        key, kw_, kb_ = jax.random.split(key, 3)
        fan_in = cin * k * k
        bound = 1.0 / (fan_in ** 0.5)
        w = jax.random.uniform(kw_, (k, k, cin, cout), jnp.float32,
                               minval=-bound, maxval=bound)      # HWIO
        b = jax.random.uniform(kb_, (cout,), jnp.float32,
                               minval=-bound, maxval=bound)
        params["main"].append((w, b))
        cin = cout
    if in_channels != channels[-1]:
        key, kw_ = jax.random.split(key)
        bound = 1.0 / (in_channels ** 0.5)
        params["shortcut"] = jax.random.uniform(
            kw_, (1, 1, in_channels, channels[-1]), jnp.float32,
            minval=-bound, maxval=bound)             # 1x1 conv, bias=False
    return params


def residual_block_forward(params, x_nchw, *, mxu_dtype=jnp.bfloat16,
                           batch_block=None):
    """Matches PyTorch ResidualBlock.forward (batchnorm=False, dropout=0).

    mxu_dtype: operand dtype fed to the MXU (bf16 for v6e/v7x throughput &
               half the weight DMA; f32 for a bit-tight v5e path).
    batch_block: batch elements per grid step.  Default = whole batch (one
               step — best on single-TC v5e/v6e); on v7x use N // 2.
    """
    N, Cin0, H, W = x_nchw.shape
    Nb = N if batch_block is None else batch_block
    assert N % Nb == 0
    # NCHW -> NHWC -> lane-dense (N, H, W*C) slab (the reshape is free).
    x2 = jnp.transpose(x_nchw, (0, 2, 3, 1)).reshape(N, H, W * Cin0)

    n_layers = len(params["main"])
    has_shortcut = params["shortcut"] is not None
    CoutL = params["main"][-1][0].shape[-1]
    # Lane-dense output (review #1): pad CoutL so W*CoutP % 128 == 0.  Only
    # when the shortcut is a 1x1 conv (identity shortcut would need channel
    # padding of x itself).
    cmul = 128 // math.gcd(W, 128)
    CoutP = _round_up(CoutL, cmul) if has_shortcut else CoutL

    layer_geom = []
    inputs = [x2]
    in_specs = [pl.BlockSpec((Nb, H, W * Cin0), lambda g: (g, 0, 0))]
    scratch_shapes = []
    cin = Cin0
    for li, (w, b) in enumerate(params["main"]):
        KH, KW, wcin, cout = w.shape
        assert KH == KW and wcin == cin
        cout_p = CoutP if li == n_layers - 1 else cout
        if cout_p != cout:
            w = jnp.pad(w, ((0, 0), (0, 0), (0, 0), (0, cout_p - cout)))
            b = jnp.pad(b, (0, cout_p - cout))
        Bw = _band_weights(w, W).astype(mxu_dtype)       # (KH, W*cin, W*cout_p)
        brow = jnp.tile(b, W).reshape(1, W * cout_p).astype(jnp.float32)
        inputs += [Bw, brow]
        in_specs += [
            pl.BlockSpec(Bw.shape, lambda g: (0, 0, 0)),
            pl.BlockSpec(brow.shape, lambda g: (0, 0)),
        ]
        p = (KH - 1) // 2
        if KH > 1:
            top = _round_up(p, 8)                    # aligned data-row start
            SEG = _round_up(top + H + p, 8)          # aligned per-element seg
            lower = (Nb - 1) * SEG + H               # rows covering all outputs
            upper = Nb * SEG - top - p               # stay in-bounds for all kh
            M_out = min(_round_up(lower, 8), upper)
            scratch_shapes.append(
                pltpu.VMEM((Nb * SEG, W * cin), jnp.float32))
            layer_geom.append((KH, cin, cout_p, top, SEG, M_out))
        else:
            layer_geom.append((KH, cin, cout_p, None, None, None))
        cin = cout

    if has_shortcut:
        wsc = params["shortcut"].reshape(Cin0, CoutL)
        if CoutP != CoutL:
            wsc = jnp.pad(wsc, ((0, 0), (0, CoutP - CoutL)))
        Bsc = _blockdiag_1x1(wsc, W).astype(mxu_dtype)   # (W*Cin0, W*CoutP)
        inputs.append(Bsc)
        in_specs.append(pl.BlockSpec(Bsc.shape, lambda g: (0, 0)))

    kernel = _make_fused_kernel(H, W, tuple(layer_geom), has_shortcut, Nb,
                                mxu_dtype, x2.dtype)
    out2 = pl.pallas_call(
        kernel,
        out_shape=jax.ShapeDtypeStruct((N, H, W * CoutP), x2.dtype),
        grid_spec=pltpu.PrefetchScalarGridSpec(
            num_scalar_prefetch=0,
            grid=(N // Nb,),
            in_specs=in_specs,
            out_specs=pl.BlockSpec((Nb, H, W * CoutP), lambda g: (g, 0, 0)),
            scratch_shapes=scratch_shapes,
        ),
        compiler_params=pltpu.CompilerParams(
            dimension_semantics=("parallel",)),
    )(*inputs)

    # (N, H, W*CoutP) -> NHWC (drop padded channels) -> NCHW
    out = out2.reshape(N, H, W, CoutP)[..., :CoutL]
    return jnp.transpose(out, (0, 3, 1, 2))


# ---------------------------------------------------------------------------
# Pure-JAX reference (for correctness check only)
# ---------------------------------------------------------------------------
def _ref_conv(x_nhwc, w, b):
    y = jax.lax.conv_general_dilated(
        x_nhwc, w, window_strides=(1, 1), padding="SAME",
        dimension_numbers=("NHWC", "HWIO", "NHWC"))
    return y + b.reshape(1, 1, 1, -1)


def _ref_forward(params, x_nchw):
    x = jnp.transpose(x_nchw, (0, 2, 3, 1))
    out = x
    n_layers = len(params["main"])
    for i, (w, b) in enumerate(params["main"]):
        out = _ref_conv(out, w, b)
        if i < n_layers - 1:
            out = jnp.maximum(out, 0.0)
    if params["shortcut"] is not None:
        sc = _ref_conv(x, params["shortcut"],
                       jnp.zeros((params["shortcut"].shape[-1],), x.dtype))
    else:
        sc = x
    out = jnp.maximum(out + sc, 0.0)
    return jnp.transpose(out, (0, 3, 1, 2))


if __name__ == "__main__":
    key = jax.random.PRNGKey(0)
    k_x, k_p = jax.random.split(key)

    # ResidualBlock(in_channels=4, channels=[8, 6], kernel_sizes=[3, 3])
    in_channels = 4
    channels = [8, 6]
    kernel_sizes = [3, 3]

    x = jax.random.normal(k_x, (2, in_channels, 16, 16), jnp.float32)  # NCHW
    params = init_residual_block_params(k_p, in_channels, channels,
                                        kernel_sizes)
    ref = _ref_forward(params, x)

    # f32 MXU-operand path (bit-tight check; v5e default).
    out_f32 = jax.block_until_ready(
        residual_block_forward(params, x, mxu_dtype=jnp.float32))
    assert out_f32.shape == (2, channels[-1], 16, 16)
    assert jnp.allclose(out_f32, ref, atol=1e-3, rtol=1e-3)

    # bf16 MXU-operand path (v6e/v7x default; f32 accumulation).
    out_bf16 = jax.block_until_ready(
        residual_block_forward(params, x, mxu_dtype=jnp.bfloat16))
    assert out_bf16.shape == (2, channels[-1], 16, 16)
    assert jnp.allclose(out_bf16, ref, atol=5e-2, rtol=5e-2)

    print("KERNEL_OK")
</pallas_src>

<mosaic_0001>
module attributes {stable_mosaic.version = 11 : i64} {
  func.func @kernel(%arg0: i32, %arg1: memref<2x16x64xf32, #tpu.memory_space<vmem>>, %arg2: memref<3x64x128xf32, #tpu.memory_space<vmem>>, %arg3: memref<1x128xf32, #tpu.memory_space<vmem>>, %arg4: memref<3x128x128xf32, #tpu.memory_space<vmem>>, %arg5: memref<1x128xf32, #tpu.memory_space<vmem>>, %arg6: memref<64x128xf32, #tpu.memory_space<vmem>>, %arg7: memref<2x16x128xf32, #tpu.memory_space<vmem>>, %arg8: memref<64x64xf32, #tpu.memory_space<vmem>>, %arg9: memref<64x128xf32, #tpu.memory_space<vmem>>) attributes {dimension_semantics = [#tpu.dimension_semantics<parallel>], iteration_bounds = array<i64: 1>, scalar_prefetch = 0 : i64, scratch_operands = 2 : i64, tpu.core_type = #tpu.core_type<tc>, window_params = [{transform_indices = @transform_0, window_bounds = array<i64: 2, 16, 64>}, {pipeline_mode = #tpu.pipeline_mode<synchronous>, transform_indices = @transform_1, window_bounds = array<i64: 3, 64, 128>}, {pipeline_mode = #tpu.pipeline_mode<synchronous>, transform_indices = @transform_2, window_bounds = array<i64: 1, 128>}, {pipeline_mode = #tpu.pipeline_mode<synchronous>, transform_indices = @transform_3, window_bounds = array<i64: 3, 128, 128>}, {pipeline_mode = #tpu.pipeline_mode<synchronous>, transform_indices = @transform_4, window_bounds = array<i64: 1, 128>}, {pipeline_mode = #tpu.pipeline_mode<synchronous>, transform_indices = @transform_5, window_bounds = array<i64: 64, 128>}, {transform_indices = @transform_6, window_bounds = array<i64: 2, 16, 128>}]} {
    %c0 = arith.constant 0 : index
    %c0_0 = arith.constant 0 : index
    %c0_1 = arith.constant 0 : index
    %0 = vector.load %arg1[%c0, %c0_0, %c0_1] : memref<2x16x64xf32, #tpu.memory_space<vmem>>, vector<2x16x64xf32>
    %1 = vector.shape_cast %0 : vector<2x16x64xf32> to vector<32x64xf32>
    %c0_2 = arith.constant 0 : index
    %c0_3 = arith.constant 0 : index
    %2 = vector.load %arg3[%c0_2, %c0_3] : memref<1x128xf32, #tpu.memory_space<vmem>>, vector<1x128xf32>
    %cst = arith.constant 0.000000e+00 : f32
    %3 = vector.broadcast %cst : f32 to vector<1x64xf32>
    %c7 = arith.constant 7 : index
    %c0_4 = arith.constant 0 : index
    %4 = vector.load %arg8[%c7, %c0_4] : memref<64x64xf32, #tpu.memory_space<vmem>>, vector<1x64xf32>
    tpu.vector_store %arg8[%c7, %c0_4], %3 {strides = array<i32>} : memref<64x64xf32, #tpu.memory_space<vmem>>, vector<1x64xf32>,
    %c24 = arith.constant 24 : index
    %c0_5 = arith.constant 0 : index
    %5 = vector.load %arg8[%c24, %c0_5] : memref<64x64xf32, #tpu.memory_space<vmem>>, vector<1x64xf32>
    tpu.vector_store %arg8[%c24, %c0_5], %3 {strides = array<i32>} : memref<64x64xf32, #tpu.memory_space<vmem>>, vector<1x64xf32>,
    %6 = vector.extract_strided_slice %1 {offsets = [0, 0], sizes = [16, 64], strides = [1, 1]} : vector<32x64xf32> to vector<16x64xf32>
    %c8 = arith.constant 8 : index
    %c0_6 = arith.constant 0 : index
    %7 = vector.load %arg8[%c8, %c0_6] : memref<64x64xf32, #tpu.memory_space<vmem>>, vector<16x64xf32>
    tpu.vector_store %arg8[%c8, %c0_6], %6 {strides = array<i32>} : memref<64x64xf32, #tpu.memory_space<vmem>>, vector<16x64xf32>,
    %c39 = arith.constant 39 : index
    %c0_7 = arith.constant 0 : index
    %8 = vector.load %arg8[%c39, %c0_7] : memref<64x64xf32, #tpu.memory_space<vmem>>, vector<1x64xf32>
    tpu.vector_store %arg8[%c39, %c0_7], %3 {strides = array<i32>} : memref<64x64xf32, #tpu.memory_space<vmem>>, vector<1x64xf32>,
    %c56 = arith.constant 56 : index
    %c0_8 = arith.constant 0 : index
    %9 = vector.load %arg8[%c56, %c0_8] : memref<64x64xf32, #tpu.memory_space<vmem>>, vector<1x64xf32>
    tpu.vector_store %arg8[%c56, %c0_8], %3 {strides = array<i32>} : memref<64x64xf32, #tpu.memory_space<vmem>>, vector<1x64xf32>,
    %10 = vector.extract_strided_slice %1 {offsets = [16, 0], sizes = [16, 64], strides = [1, 1]} : vector<32x64xf32> to vector<16x64xf32>
    %c40 = arith.constant 40 : index
    %c0_9 = arith.constant 0 : index
    %11 = vector.load %arg8[%c40, %c0_9] : memref<64x64xf32, #tpu.memory_space<vmem>>, vector<16x64xf32>
    tpu.vector_store %arg8[%c40, %c0_9], %10 {strides = array<i32>} : memref<64x64xf32, #tpu.memory_space<vmem>>, vector<16x64xf32>,
    %c7_10 = arith.constant 7 : index
    %c0_11 = arith.constant 0 : index
    %12 = vector.load %arg8[%c7_10, %c0_11] : memref<64x64xf32, #tpu.memory_space<vmem>>, vector<48x64xf32>
    %c0_12 = arith.constant 0 : index
    %c0_13 = arith.constant 0 : index
    %c0_14 = arith.constant 0 : index
    %13 = vector.load %arg2[%c0_12, %c0_13, %c0_14] : memref<3x64x128xf32, #tpu.memory_space<vmem>>, vector<1x64x128xf32>
    %14 = vector.shape_cast %13 : vector<1x64x128xf32> to vector<64x128xf32>
    %cst_15 = arith.constant dense<0.000000e+00> : vector<48x128xf32>
    %15 = tpu.matmul %12, %14, %cst_15 {dimension_numbers = #tpu.dot_dimension_numbers<[1], [0], [0], [1], [0, 0, 1, 1], [], []>} : vector<48x64xf32>, vector<64x128xf32>, vector<48x128xf32> -> vector<48x128xf32>
    %c8_16 = arith.constant 8 : index
    %c0_17 = arith.constant 0 : index
    %16 = vector.load %arg8[%c8_16, %c0_17] : memref<64x64xf32, #tpu.memory_space<vmem>>, vector<48x64xf32>
    %c1 = arith.constant 1 : index
    %c0_18 = arith.constant 0 : index
    %c0_19 = arith.constant 0 : index
    %17 = vector.load %arg2[%c1, %c0_18, %c0_19] : memref<3x64x128xf32, #tpu.memory_space<vmem>>, vector<1x64x128xf32>
    %18 = vector.shape_cast %17 : vector<1x64x128xf32> to vector<64x128xf32>
    %cst_20 = arith.constant dense<0.000000e+00> : vector<48x128xf32>
    %19 = tpu.matmul %16, %18, %cst_20 {dimension_numbers = #tpu.dot_dimension_numbers<[1], [0], [0], [1], [0, 0, 1, 1], [], []>} : vector<48x64xf32>, vector<64x128xf32>, vector<48x128xf32> -> vector<48x128xf32>
    %20 = arith.addf %15, %19 : vector<48x128xf32>
    %c9 = arith.constant 9 : index
    %c0_21 = arith.constant 0 : index
    %21 = vector.load %arg8[%c9, %c0_21] : memref<64x64xf32, #tpu.memory_space<vmem>>, vector<48x64xf32>
    %c2 = arith.constant 2 : index
    %c0_22 = arith.constant 0 : index
    %c0_23 = arith.constant 0 : index
    %22 = vector.load %arg2[%c2, %c0_22, %c0_23] : memref<3x64x128xf32, #tpu.memory_space<vmem>>, vector<1x64x128xf32>
    %23 = vector.shape_cast %22 : vector<1x64x128xf32> to vector<64x128xf32>
    %cst_24 = arith.constant dense<0.000000e+00> : vector<48x128xf32>
    %24 = tpu.matmul %21, %23, %cst_24 {dimension_numbers = #tpu.dot_dimension_numbers<[1], [0], [0], [1], [0, 0, 1, 1], [], []>} : vector<48x64xf32>, vector<64x128xf32>, vector<48x128xf32> -> vector<48x128xf32>
    %25 = arith.addf %20, %24 : vector<48x128xf32>
    %26 = vector.broadcast %2 : vector<1x128xf32> to vector<48x128xf32>
    %27 = arith.addf %25, %26 : vector<48x128xf32>
    %cst_25 = arith.constant 0.000000e+00 : f32
    %28 = vector.broadcast %cst_25 : f32 to vector<48x128xf32>
    %29 = arith.maximumf %27, %28 : vector<48x128xf32>
    %c0_26 = arith.constant 0 : index
    %c0_27 = arith.constant 0 : index
    %30 = vector.load %arg5[%c0_26, %c0_27] : memref<1x128xf32, #tpu.memory_space<vmem>>, vector<1x128xf32>
    %cst_28 = arith.constant 0.000000e+00 : f32
    %31 = vector.broadcast %cst_28 : f32 to vector<1x128xf32>
    %c7_29 = arith.constant 7 : index
    %c0_30 = arith.constant 0 : index
    %32 = vector.load %arg9[%c7_29, %c0_30] : memref<64x128xf32, #tpu.memory_space<vmem>>, vector<1x128xf32>
    tpu.vector_store %arg9[%c7_29, %c0_30], %31 {strides = array<i32>} : memref<64x128xf32, #tpu.memory_space<vmem>>, vector<1x128xf32>,
    %c24_31 = arith.constant 24 : index
    %c0_32 = arith.constant 0 : index
    %33 = vector.load %arg9[%c24_31, %c0_32] : memref<64x128xf32, #tpu.memory_space<vmem>>, vector<1x128xf32>
    tpu.vector_store %arg9[%c24_31, %c0_32], %31 {strides = array<i32>} : memref<64x128xf32, #tpu.memory_space<vmem>>, vector<1x128xf32>,
    %34 = vector.extract_strided_slice %29 {offsets = [0, 0], sizes = [16, 128], strides = [1, 1]} : vector<48x128xf32> to vector<16x128xf32>
    %c8_33 = arith.constant 8 : index
    %c0_34 = arith.constant 0 : index
    %35 = vector.load %arg9[%c8_33, %c0_34] : memref<64x128xf32, #tpu.memory_space<vmem>>, vector<16x128xf32>
    tpu.vector_store %arg9[%c8_33, %c0_34], %34 {strides = array<i32>} : memref<64x128xf32, #tpu.memory_space<vmem>>, vector<16x128xf32>,
    %c39_35 = arith.constant 39 : index
    %c0_36 = arith.constant 0 : index
    %36 = vector.load %arg9[%c39_35, %c0_36] : memref<64x128xf32, #tpu.memory_space<vmem>>, vector<1x128xf32>
    tpu.vector_store %arg9[%c39_35, %c0_36], %31 {strides = array<i32>} : memref<64x128xf32, #tpu.memory_space<vmem>>, vector<1x128xf32>,
    %c56_37 = arith.constant 56 : index
    %c0_38 = arith.constant 0 : index
    %37 = vector.load %arg9[%c56_37, %c0_38] : memref<64x128xf32, #tpu.memory_space<vmem>>, vector<1x128xf32>
    tpu.vector_store %arg9[%c56_37, %c0_38], %31 {strides = array<i32>} : memref<64x128xf32, #tpu.memory_space<vmem>>, vector<1x128xf32>,
    %38 = vector.extract_strided_slice %29 {offsets = [32, 0], sizes = [16, 128], strides = [1, 1]} : vector<48x128xf32> to vector<16x128xf32>
    %c40_39 = arith.constant 40 : index
    %c0_40 = arith.constant 0 : index
    %39 = vector.load %arg9[%c40_39, %c0_40] : memref<64x128xf32, #tpu.memory_space<vmem>>, vector<16x128xf32>
    tpu.vector_store %arg9[%c40_39, %c0_40], %38 {strides = array<i32>} : memref<64x128xf32, #tpu.memory_space<vmem>>, vector<16x128xf32>,
    %c7_41 = arith.constant 7 : index
    %c0_42 = arith.constant 0 : index
    %40 = vector.load %arg9[%c7_41, %c0_42] : memref<64x128xf32, #tpu.memory_space<vmem>>, vector<48x128xf32>
    %c0_43 = arith.constant 0 : index
    %c0_44 = arith.constant 0 : index
    %c0_45 = arith.constant 0 : index
    %41 = vector.load %arg4[%c0_43, %c0_44, %c0_45] : memref<3x128x128xf32, #tpu.memory_space<vmem>>, vector<1x128x128xf32>
    %42 = vector.shape_cast %41 : vector<1x128x128xf32> to vector<128x128xf32>
    %cst_46 = arith.constant dense<0.000000e+00> : vector<48x128xf32>
    %43 = tpu.matmul %40, %42, %cst_46 {dimension_numbers = #tpu.dot_dimension_numbers<[1], [0], [0], [1], [0, 0, 1, 1], [], []>} : vector<48x128xf32>, vector<128x128xf32>, vector<48x128xf32> -> vector<48x128xf32>
    %c8_47 = arith.constant 8 : index
    %c0_48 = arith.constant 0 : index
    %44 = vector.load %arg9[%c8_47, %c0_48] : memref<64x128xf32, #tpu.memory_space<vmem>>, vector<48x128xf32>
    %c1_49 = arith.constant 1 : index
    %c0_50 = arith.constant 0 : index
    %c0_51 = arith.constant 0 : index
    %45 = vector.load %arg4[%c1_49, %c0_50, %c0_51] : memref<3x128x128xf32, #tpu.memory_space<vmem>>, vector<1x128x128xf32>
    %46 = vector.shape_cast %45 : vector<1x128x128xf32> to vector<128x128xf32>
    %cst_52 = arith.constant dense<0.000000e+00> : vector<48x128xf32>
    %47 = tpu.matmul %44, %46, %cst_52 {dimension_numbers = #tpu.dot_dimension_numbers<[1], [0], [0], [1], [0, 0, 1, 1], [], []>} : vector<48x128xf32>, vector<128x128xf32>, vector<48x128xf32> -> vector<48x128xf32>
    %48 = arith.addf %43, %47 : vector<48x128xf32>
    %c9_53 = arith.constant 9 : index
    %c0_54 = arith.constant 0 : index
    %49 = vector.load %arg9[%c9_53, %c0_54] : memref<64x128xf32, #tpu.memory_space<vmem>>, vector<48x128xf32>
    %c2_55 = arith.constant 2 : index
    %c0_56 = arith.constant 0 : index
    %c0_57 = arith.constant 0 : index
    %50 = vector.load %arg4[%c2_55, %c0_56, %c0_57] : memref<3x128x128xf32, #tpu.memory_space<vmem>>, vector<1x128x128xf32>
    %51 = vector.shape_cast %50 : vector<1x128x128xf32> to vector<128x128xf32>
    %cst_58 = arith.constant dense<0.000000e+00> : vector<48x128xf32>
    %52 = tpu.matmul %49, %51, %cst_58 {dimension_numbers = #tpu.dot_dimension_numbers<[1], [0], [0], [1], [0, 0, 1, 1], [], []>} : vector<48x128xf32>, vector<128x128xf32>, vector<48x128xf32> -> vector<48x128xf32>
    %53 = arith.addf %48, %52 : vector<48x128xf32>
    %54 = vector.broadcast %30 : vector<1x128xf32> to vector<48x128xf32>
    %55 = arith.addf %53, %54 : vector<48x128xf32>
    %c0_59 = arith.constant 0 : index
    %c0_60 = arith.constant 0 : index
    %56 = vector.load %arg6[%c0_59, %c0_60] : memref<64x128xf32, #tpu.memory_space<vmem>>, vector<64x128xf32>
    %cst_61 = arith.constant dense<0.000000e+00> : vector<32x128xf32>
    %57 = tpu.matmul %1, %56, %cst_61 {dimension_numbers = #tpu.dot_dimension_numbers<[1], [0], [0], [1], [0, 0, 1, 1], [], []>} : vector<32x64xf32>, vector<64x128xf32>, vector<32x128xf32> -> vector<32x128xf32>
    %58 = vector.extract_strided_slice %55 {offsets = [0, 0], sizes = [16, 128], strides = [1, 1]} : vector<48x128xf32> to vector<16x128xf32>
    %59 = vector.extract_strided_slice %57 {offsets = [0, 0], sizes = [16, 128], strides = [1, 1]} : vector<32x128xf32> to vector<16x128xf32>
    %60 = arith.addf %58, %59 : vector<16x128xf32>
    %cst_62 = arith.constant 0.000000e+00 : f32
    %61 = vector.broadcast %cst_62 : f32 to vector<16x128xf32>
    %62 = arith.maximumf %60, %61 : vector<16x128xf32>
    %c0_63 = arith.constant 0 : index
    %c0_64 = arith.constant 0 : index
    %c0_65 = arith.constant 0 : index
    %63 = vector.load %arg7[%c0_63, %c0_64, %c0_65] : memref<2x16x128xf32, #tpu.memory_space<vmem>>, vector<1x16x128xf32>
    %64 = vector.shape_cast %63 : vector<1x16x128xf32> to vector<16x128xf32>
    %65 = vector.shape_cast %62 : vector<16x128xf32> to vector<1x16x128xf32>
    tpu.vector_store %arg7[%c0_63, %c0_64, %c0_65], %65 {strides = array<i32>} : memref<2x16x128xf32, #tpu.memory_space<vmem>>, vector<1x16x128xf32>,
    %66 = vector.extract_strided_slice %55 {offsets = [32, 0], sizes = [16, 128], strides = [1, 1]} : vector<48x128xf32> to vector<16x128xf32>
    %67 = vector.extract_strided_slice %57 {offsets = [16, 0], sizes = [16, 128], strides = [1, 1]} : vector<32x128xf32> to vector<16x128xf32>
    %68 = arith.addf %66, %67 : vector<16x128xf32>
    %cst_66 = arith.constant 0.000000e+00 : f32
    %69 = vector.broadcast %cst_66 : f32 to vector<16x128xf32>
    %70 = arith.maximumf %68, %69 : vector<16x128xf32>
    %c1_67 = arith.constant 1 : index
    %c0_68 = arith.constant 0 : index
    %c0_69 = arith.constant 0 : index
    %71 = vector.load %arg7[%c1_67, %c0_68, %c0_69] : memref<2x16x128xf32, #tpu.memory_space<vmem>>, vector<1x16x128xf32>
    %72 = vector.shape_cast %71 : vector<1x16x128xf32> to vector<16x128xf32>
    %73 = vector.shape_cast %70 : vector<16x128xf32> to vector<1x16x128xf32>
    tpu.vector_store %arg7[%c1_67, %c0_68, %c0_69], %73 {strides = array<i32>} : memref<2x16x128xf32, #tpu.memory_space<vmem>>, vector<1x16x128xf32>,
    return
  }
  func.func @transform_0(%arg0: i32) -> (i32, i32, i32) {
    %c0_i32 = arith.constant 0 : i32
    %c0_i32_0 = arith.constant 0 : i32
    %c0_i32_1 = arith.constant 0 : i32
    return %arg0, %c0_i32, %c0_i32_0 : i32, i32, i32
  }
  func.func @transform_1(%arg0: i32) -> (i32, i32, i32) {
    %c0_i32 = arith.constant 0 : i32
    %c0_i32_0 = arith.constant 0 : i32
    %c0_i32_1 = arith.constant 0 : i32
    %c0_i32_2 = arith.constant 0 : i32
    return %c0_i32, %c0_i32_0, %c0_i32_1 : i32, i32, i32
  }
  func.func @transform_2(%arg0: i32) -> (i32, i32) {
    %c0_i32 = arith.constant 0 : i32
    %c0_i32_0 = arith.constant 0 : i32
    %c0_i32_1 = arith.constant 0 : i32
    return %c0_i32, %c0_i32_0 : i32, i32
  }
  func.func @transform_3(%arg0: i32) -> (i32, i32, i32) {
    %c0_i32 = arith.constant 0 : i32
    %c0_i32_0 = arith.constant 0 : i32
    %c0_i32_1 = arith.constant 0 : i32
    %c0_i32_2 = arith.constant 0 : i32
    return %c0_i32, %c0_i32_0, %c0_i32_1 : i32, i32, i32
  }
  func.func @transform_4(%arg0: i32) -> (i32, i32) {
    %c0_i32 = arith.constant 0 : i32
    %c0_i32_0 = arith.constant 0 : i32
    %c0_i32_1 = arith.constant 0 : i32
    return %c0_i32, %c0_i32_0 : i32, i32
  }
  func.func @transform_5(%arg0: i32) -> (i32, i32) {
    %c0_i32 = arith.constant 0 : i32
    %c0_i32_0 = arith.constant 0 : i32
    %c0_i32_1 = arith.constant 0 : i32
    return %c0_i32, %c0_i32_0 : i32, i32
  }
  func.func @transform_6(%arg0: i32) -> (i32, i32, i32) {
    %c0_i32 = arith.constant 0 : i32
    %c0_i32_0 = arith.constant 0 : i32
    %c0_i32_1 = arith.constant 0 : i32
    return %arg0, %c0_i32, %c0_i32_0 : i32, i32, i32
  }
}

</mosaic_0001>

<bundles_post_ra>
// kernel: tpu_custom_call.1
= control target key start
LH: loop header
LB: loop body
LE: loop exit
PB: predicated region body
PF: predicated region fallthrough
CT: control target
= control target key end

     0   :  { %11 = vsyncpa [#allocation5], 0  ;;  %s1601_s0 = inlined_call_operand.hbm [shape: f32[2,16,64], index: 0, kind: input, shape index: {}]   ;;  %s1602_s1 = inlined_call_operand.hbm [shape: f32[3,64,128], index: 1, kind: input, shape index: {}]   ;;  %s1603_s2 = inlined_call_operand.vmem [shape: f32[1,128], index: 2, kind: input, shape index: {}]   ;;  %s1604_s3 = inlined_call_operand.hbm [shape: f32[3,128,128], index: 3, kind: input, shape index: {}]   ;;  %s1605_s4 = inlined_call_operand.vmem [shape: f32[1,128], index: 4, kind: input, shape index: {}]   ;;  %s1606_s5 = inlined_call_operand.hbm [shape: f32[64,128], index: 5, kind: input, shape index: {}]   ;;  %s1607_s6 = inlined_call_operand.hbm [shape: f32[2,16,128], index: 6, kind: output, shape index: {}]  }
   0x1   :  { %12 = vsyncpa [#allocation8], 0 }
   0x2   :  { %13 = vsyncpa [#allocation11], 0 }
   0x3   :  { %14 = vsyncpa [#allocation6], 0  ;;  %s1476_s21 = smov [#allocation7]   ;;  %s1477_s23 = smov [#allocation4]  }
   0x4   :  { %s32_s22 = sshll.u32 %s1476_s21, 4  ;;  %s20_s24 = sshll.u32 %s1477_s23, 4  ;;  %s33_s22 = int_to_ptr.vmem [resolvable:$true] %s32_s22  ;;  %s21_s24 = int_to_ptr.vmem [resolvable:$true] %s20_s24 }
   0x5   :  { %s1376_s25 = scalar_lea.vmem %s33_s22, 3072  ;;  %p1381_p1 = scmp.lt.s32.totalorder %s33_s22, %s33_s22 }
   0x6   :  { %p1377_p0 = scmp.ne.s32.totalorder %s33_s22, %s1376_s25  ;;  %p1382_p2 = scmp.lt.s32.totalorder %s1376_s25, %s1376_s25 }
   0x8   :  { %p1383_p3 = por %p1382_p2, %p1381_p1 }
   0xa   :  { %p1384_p4 = pnand %p1383_p3, %p1377_p0 }
   0xc   :  { %1387 = shalt.err (!%p1384_p4)
}
   0xd   :  { %s1478_s26 = smov 128   ;;  %s1479_s27 = smov 8  }
   0xe   :  { %38 = dma.hbm_to_vmem [thread:$0]  %s1602_s1, 3072, %s33_s22, [#allocation8], %s1478_s26, %s1478_s26, %s1479_s27  }
   0xf   :  { %s1396_s30 = scalar_lea.vmem %s21_s24, 512  ;;  %p1401_p6 = scmp.lt.s32.totalorder %s21_s24, %s21_s24 }
  0x10   :  { %p1397_p5 = scmp.ne.s32.totalorder %s21_s24, %s1396_s30  ;;  %p1402_p7 = scmp.lt.s32.totalorder %s1396_s30, %s1396_s30 }
  0x12   :  { %p1403_p8 = por %p1402_p7, %p1401_p6 }
  0x14   :  { %p1404_p9 = pnand %p1403_p8, %p1397_p5 }
  0x16   :  { %1407 = shalt.err (!%p1404_p9)
}
  0x17   :  { %26 = dma.hbm_to_vmem [thread:$0]  %s1601_s0, 512, %s21_s24, [#allocation5], %s1478_s26, %s1478_s26, %s1479_s27  }
  0x18   :  { %s1480_s9 = smov [#allocation9]   ;;  %s1481_s11 = smov [#allocation10]  }
  0x19   :  { %s46_s10 = sshll.u32 %s1480_s9, 4  ;;  %s60_s12 = sshll.u32 %s1481_s11, 4  ;;  %s47_s10 = int_to_ptr.vmem [resolvable:$true] %s46_s10  ;;  %s61_s12 = int_to_ptr.vmem [resolvable:$true] %s60_s12 }
  0x1a   :  { %s1416_s1 = scalar_lea.vmem %s47_s10, 6144  ;;  %p1421_p11 = scmp.lt.s32.totalorder %s47_s10, %s47_s10 }
  0x1b   :  { %p1417_p10 = scmp.ne.s32.totalorder %s47_s10, %s1416_s1  ;;  %p1422_p12 = scmp.lt.s32.totalorder %s1416_s1, %s1416_s1 }
  0x1d   :  { %p1423_p13 = por %p1422_p12, %p1421_p11 }
  0x1f   :  { %p1424_p0 = pnand %p1423_p13, %p1417_p10 }
  0x21   :  { %1427 = shalt.err (!%p1424_p0)
}
  0x22   :  { %52 = dma.hbm_to_vmem [thread:$0]  %s1604_s3, 6144, %s47_s10, [#allocation8], %s1478_s26, %s1478_s26, %s1479_s27  }
  0x23   :  { %s1436_s0 = scalar_lea.vmem %s61_s12, 1024  ;;  %p1441_p2 = scmp.lt.s32.totalorder %s61_s12, %s61_s12 }
  0x24   :  { %p1437_p1 = scmp.ne.s32.totalorder %s61_s12, %s1436_s0  ;;  %p1442_p3 = scmp.lt.s32.totalorder %s1436_s0, %s1436_s0 }
  0x26   :  { %p1443_p4 = por %p1442_p3, %p1441_p2 }
  0x28   :  { %p1444_p5 = pnand %p1443_p4, %p1437_p1 }
  0x2a   :  { %1447 = shalt.err (!%p1444_p5)
}
  0x2b   :  { %66 = dma.hbm_to_vmem [thread:$0]  %s1606_s5, 1024, %s61_s12, [#allocation11], %s1478_s26, %s1478_s26, %s1479_s27  }
  0x2c   :  { %1468 = dma.done.wait [#allocation5], 512  }
  0x2d   :  { %1469 = vsyncadd [#allocation5], 4294966784 }
  0x2e   :  { %1470 = dma.done.wait [#allocation8], 9216  }
  0x2f   :  { %1471 = vsyncadd [#allocation8], 4294958080 }
  0x30   :  { %1472 = dma.done.wait [#allocation11], 1024  }
  0x31   :  { %1473 = vsyncadd [#allocation11], 4294966272  ;;  %vm84_vm0 = vcmask 516096   ;;  %v1482_v0 = vmov 0.0   ;;  %v122_v1 = vld [vmem:[#allocation7 + $0x78] sm:$0xff]  ;;  %v121_v3 = vld [vmem:[#allocation7 + $0x70] sm:$0xff] }
  0x32   :  { %85 = vst.msk [vmem:[#allocation2 + $0x7] sm:$0x1] %vm84_vm0, %v1482_v0  ;;  %86 = vst.msk [vmem:[#allocation2 + $0x18] sm:$0x1] %vm84_vm0, %v1482_v0  ;;  %v107_v2 = vld [vmem:[#allocation7 + $0x38] sm:$0xff]  ;;  %1140 = vmatprep.subr.mxu0 %v122_v1  ;;  %v106_v4 = vld [vmem:[#allocation7 + $0x30] sm:$0xff] }
  0x33   :  { %90 = vst.msk [vmem:[#allocation2 + $0x27] sm:$0x1] %vm84_vm0, %v1482_v0  ;;  %91 = vst.msk [vmem:[#allocation2 + $0x38] sm:$0x1] %vm84_vm0, %v1482_v0  ;;  %1165 = vmatprep.subr.mxu1 %v107_v2  ;;  %1141 = vmatpush3.msra.mxu0 %v122_v1  ;;  %v120_v5 = vld [vmem:[#allocation7 + $0x68] sm:$0xff]  ;;  %vm87_vm1 = vcmask 523264  }
  0x34   :  { %490 = vst [vmem:[#allocation3 + $0x7] sm:$0x1] %v1482_v0  ;;  %491 = vst [vmem:[#allocation3 + $0x18] sm:$0x1] %v1482_v0  ;;  %1166 = vmatpush3.msra.mxu1 %v107_v2  ;;  %v105_v6 = vld [vmem:[#allocation7 + $0x28] sm:$0xff]  ;;  %1142 = vmatprep.subr.mxu0 %v121_v3  ;;  %v119_v7 = vld [vmem:[#allocation7 + $0x60] sm:$0xff] }
  0x35   :  { %494 = vst [vmem:[#allocation3 + $0x27] sm:$0x1] %v1482_v0  ;;  %495 = vst [vmem:[#allocation3 + $0x38] sm:$0x1] %v1482_v0  ;;  %1167 = vmatprep.subr.mxu1 %v106_v4  ;;  %1143 = vmatpush3.msra.mxu0 %v121_v3  ;;  %v104_v8 = vld [vmem:[#allocation7 + $0x20] sm:$0xff]  ;;  %v1545_v10 = vld [vmem:[#allocation4 + $0x8] sm:$0xff] }
  0x36   :  { %1168 = vmatpush3.msra.mxu1 %v106_v4  ;;  %1144 = vmatprep.subr.mxu0 %v120_v5  ;;  %v1543_v9 = vld [vmem:[#allocation4] sm:$0xff]  ;;  %v118_v11 = vld [vmem:[#allocation7 + $0x58] sm:$0xff]  ;;  %89 = vst.msk [vmem:[#allocation2 + $0x10] sm:$0xff] %vm87_vm1, %v1545_v10  ;;  %v117_v13 = vld [vmem:[#allocation7 + $0x50] sm:$0xff] }
  0x37   :  { %1169 = vmatprep.subr.mxu1 %v105_v6  ;;  %1145 = vmatpush3.msra.mxu0 %v120_v5  ;;  %v103_v12 = vld [vmem:[#allocation7 + $0x18] sm:$0xff]  ;;  %88 = vst.msk [vmem:[#allocation2 + $0x8] sm:$0xff] %vm87_vm1, %v1543_v9  ;;  %v102_v14 = vld [vmem:[#allocation7 + $0x10] sm:$0xff]  ;;  %v116_v17 = vld [vmem:[#allocation7 + $0x48] sm:$0xff] }
  0x38   :  { %1170 = vmatpush3.msra.mxu1 %v105_v6  ;;  %1146 = vmatprep.subr.mxu0 %v119_v7  ;;  %v1551_v15 = vld [vmem:[#allocation4 + $0x10] sm:$0xff]  ;;  %v1555_v16 = vld [vmem:[#allocation4 + $0x18] sm:$0xff]  ;;  %v101_v18 = vld [vmem:[#allocation7 + $0x8] sm:$0xff] }
  0x39   :  { %1171 = vmatprep.subr.mxu1 %v104_v8  ;;  %1147 = vmatpush3.msra.mxu0 %v119_v7  ;;  %92 = vst.msk [vmem:[#allocation2 + $0x28] sm:$0xff] %vm87_vm1, %v1551_v15  ;;  %93 = vst.msk [vmem:[#allocation2 + $0x30] sm:$0xff] %vm87_vm1, %v1555_v16  ;;  %v115_v19 = vld [vmem:[#allocation7 + $0x40] sm:$0xff]  ;;  %v359_v25 = vld [vmem:[#allocation7 + $0xb8] sm:$0xff] }
  0x3a   :  { %1172 = vmatpush3.msra.mxu1 %v104_v8  ;;  %1148 = vmatprep.subr.mxu0 %v118_v11  ;;  %v100_v20 = vld [vmem:[#allocation7] sm:$0xff]  ;;  %v110_v26 = vld [vmem:[#allocation2 + $0x18] sm:$0xff]  ;;  %v358_v28 = vld [vmem:[#allocation7 + $0xb0] sm:$0xff] }
  0x3b   :  { %1173 = vmatprep.subr.mxu1 %v103_v12  ;;  %1149 = vmatpush3.msra.mxu0 %v118_v11  ;;  %v97_v29 = vld [vmem:[#allocation2 + $0x1f] sm:$0xff]  ;;  %v357_v30 = vld [vmem:[#allocation7 + $0xa8] sm:$0xff]  ;;  %v354_v39 = vld [vmem:[#allocation7 + $0x90] sm:$0xff] }
  0x3c   :  { %1174 = vmatpush3.msra.mxu1 %v103_v12  ;;  %1150 = vmatprep.subr.mxu0 %v117_v13  ;;  %v111_v31 = vld [vmem:[#allocation2 + $0x20] sm:$0xff]  ;;  %v355_v36 = vld [vmem:[#allocation7 + $0x98] sm:$0xff]  ;;  %v353_v40 = vld [vmem:[#allocation7 + $0x88] sm:$0xff] }
  0x3d   :  { %1175 = vmatprep.subr.mxu1 %v102_v14  ;;  %1151 = vmatpush3.msra.mxu0 %v117_v13  ;;  %v109_v23 = vld [vmem:[#allocation2 + $0x10] sm:$0xff]  ;;  %v356_v33 = vld [vmem:[#allocation7 + $0xa0] sm:$0xff]  ;;  %v542_v47 = vld [vmem:[#allocation9 + $0xf8] sm:$0xff] }
  0x3e   :  { %1176 = vmatpush3.msra.mxu1 %v102_v14  ;;  %1152 = vmatprep.subr.mxu0 %v116_v17  ;;  %v108_v21 = vld [vmem:[#allocation2 + $0x8] sm:$0xff]  ;;  %v96_v27 = vld [vmem:[#allocation2 + $0x17] sm:$0xff]  ;;  %v352_v41 = vld [vmem:[#allocation7 + $0x80] sm:$0xff] }
  0x3f   :  { %1177 = vmatprep.subr.mxu1 %v101_v18  ;;  %1153 = vmatpush3.msra.mxu0 %v116_v17  ;;  %v94_v22 = vld [vmem:[#allocation2 + $0x7] sm:$0xff]  ;;  %v95_v24 = vld [vmem:[#allocation2 + $0xf] sm:$0xff]  ;;  %v347_v43 = vld [vmem:[#allocation2 + $0x19] sm:$0xff] }
  0x40   :  { %1178 = vmatpush3.msra.mxu1 %v101_v18  ;;  %1154 = vmatprep.subr.mxu0 %v115_v19  ;;  %v112_v32 = vld [vmem:[#allocation2 + $0x28] sm:$0xff]  ;;  %v113_v37 = vld [vmem:[#allocation2 + $0x30] sm:$0xff]  ;;  %v539_v50 = vld [vmem:[#allocation9 + $0xe0] sm:$0xff] }
  0x41   :  { %1179 = vmatprep.subr.mxu1 %v100_v20  ;;  %1155 = vmatpush3.msra.mxu0 %v115_v19  ;;  %v98_v34 = vld [vmem:[#allocation2 + $0x27] sm:$0xff]  ;;  %v99_v35 = vld [vmem:[#allocation2 + $0x2f] sm:$0xff]  ;;  %v538_v51 = vld [vmem:[#allocation9 + $0xd8] sm:$0xff] }
  0x42   :  { %1156 = vmatprep.mubr.msk.f32.mxu0 %vm87_vm1, %v108_v21  ;;  %1180 = vmatpush3.msra.mxu1 %v100_v20  ;;  %v345_v38 = vld [vmem:[#allocation2 + $0x9] sm:$0xff]  ;;  %v346_v42 = vld [vmem:[#allocation2 + $0x11] sm:$0xff]  ;;  %v348_v44 = vld [vmem:[#allocation2 + $0x21] sm:$0xff] }
  0x43   :  { %1181 = vmatprep.mubr.msk.f32.mxu1 %vm87_vm1, %v94_v22  ;;  %1157 = vmatmul.mubr.msk.f32.vlgmr.msra.gmra.mxu0 %vm87_vm1, %v109_v23  ;;  %v349_v45 = vld [vmem:[#allocation2 + $0x29] sm:$0xff]  ;;  %v350_v46 = vld [vmem:[#allocation2 + $0x31] sm:$0xff]  ;;  %v516_v57 = vld [vmem:[#allocation9 + $0x60] sm:$0xff] }
  0x44   :  { %1182 = vmatmul.mubr.msk.f32.vlgmr.msra.gmra.mxu1 %vm87_vm1, %v95_v24  ;;  %1190 = vmatprep.subr.mxu0 %v359_v25  ;;  %v541_v48 = vld [vmem:[#allocation9 + $0xf0] sm:$0xff]  ;;  %v540_v49 = vld [vmem:[#allocation9 + $0xe8] sm:$0xff]  ;;  %v519_v52 = vld [vmem:[#allocation9 + $0x78] sm:$0xff] }
  0x45   :  { %1159 = vmatprep.mubr.msk.f32.mxu0 %vm87_vm1, %v110_v26  ;;  %1191 = vmatpush3.msra.mxu0 %v359_v25  ;;  %v518_v53 = vld [vmem:[#allocation9 + $0x70] sm:$0xff]  ;;  %v517_v55 = vld [vmem:[#allocation9 + $0x68] sm:$0xff]  ;;  %v535_v58 = vld [vmem:[#allocation9 + $0xc0] sm:$0xff] }
  0x46   :  { %1184 = vmatprep.mubr.msk.f32.mxu1 %vm87_vm1, %v96_v27  ;;  %1192 = vmatprep.subr.mxu0 %v358_v28  ;;  %v537_v54 = vld [vmem:[#allocation9 + $0xd0] sm:$0xff]  ;;  %v536_v56 = vld [vmem:[#allocation9 + $0xc8] sm:$0xff]  ;;  %v534_v59 = vld [vmem:[#allocation9 + $0xb8] sm:$0xff] }
  0x47   :  { %1193 = vmatpush3.msra.mxu0 %v358_v28  ;;  %1215 = vmatprep.subr.mxu1 %v542_v47  ;;  %v515_v60 = vld [vmem:[#allocation9 + $0x58] sm:$0xff]  ;;  %v533_v61 = vld [vmem:[#allocation9 + $0xb0] sm:$0xff]  ;;  %v513_v63 = vld [vmem:[#allocation9 + $0x48] sm:$0xff] }
  0x48   :  { %1185 = vmatmul.mubr.msk.f32.gmra.mxu1 %vm87_vm1, %v97_v29  ;;  %1194 = vmatprep.subr.mxu0 %v357_v30  ;;  %v514_v62 = vld [vmem:[#allocation9 + $0x50] sm:$0xff]  ;;  %v532_v0 = vld [vmem:[#allocation9 + $0xa8] sm:$0xff]  ;;  %v531_v1 = vld [vmem:[#allocation9 + $0xa0] sm:$0xff] }
  0x49   :  { %1160 = vmatmul.mubr.msk.f32.gmra.mxu0 %vm87_vm1, %v111_v31  ;;  %1187 = vmatprep.mubr.msk.f32.mxu1 %vm87_vm1, %v98_v34  ;;  %v512_v2 = vld [vmem:[#allocation9 + $0x40] sm:$0xff]  ;;  %v530_v3 = vld [vmem:[#allocation9 + $0x98] sm:$0xff]  ;;  %v529_v5 = vld [vmem:[#allocation9 + $0x90] sm:$0xff] }
  0x4a   :  { %1195 = vmatpush3.msra.mxu0 %v357_v30  ;;  %1162 = vmatprep.mubr.msk.f32.mxu0 %vm87_vm1, %v112_v32  ;;  %v511_v4 = vld [vmem:[#allocation9 + $0x38] sm:$0xff]  ;;  %v510_v6 = vld [vmem:[#allocation9 + $0x30] sm:$0xff]  ;;  %v528_v7 = vld [vmem:[#allocation9 + $0x88] sm:$0xff] }
  0x4b   :  { %1196 = vmatprep.subr.mxu0 %v356_v33  ;;  %1216 = vmatpush3.msra.mxu1 %v542_v47  ;;  %v509_v8 = vld [vmem:[#allocation9 + $0x28] sm:$0xff]  ;;  %v527_v11 = vld [vmem:[#allocation9 + $0x80] sm:$0xff]  ;;  %v751_v13 = vld [vmem:[#allocation9 + $0x178] sm:$0xff] }
  0x4c   :  { %1197 = vmatpush3.msra.mxu0 %v356_v33  ;;  %1188 = vmatmul.mubr.msk.f32.gmra.mxu1 %vm87_vm1, %v99_v35  ;;  %v508_v12 = vld [vmem:[#allocation9 + $0x20] sm:$0xff]  ;;  %v507_v14 = vld [vmem:[#allocation9 + $0x18] sm:$0xff]  ;;  %v506_v17 = vld [vmem:[#allocation9 + $0x10] sm:$0xff] }
  0x4d   :  { %1198 = vmatprep.subr.mxu0 %v355_v36  ;;  %1163 = vmatmul.mubr.msk.f32.gmra.mxu0 %vm87_vm1, %v113_v37  ;;  %v505_v18 = vld [vmem:[#allocation9 + $0x8] sm:$0xff]  ;;  %v504_v19 = vld [vmem:[#allocation9] sm:$0xff]  ;;  %v1577_v20 = vld [vmem:[#allocation10 + $0x38] sm:$0xff] }
  0x4e   :  { %1199 = vmatpush3.msra.mxu0 %v355_v36  ;;  %1206 = vmatprep.mubr.msk.f32.mxu0 %vm87_vm1, %v345_v38  ;;  %v1014_v32 = vld [vmem:[%s1603_s2] ss:$0 sm:$0xff] }
  0x4f   :  { %1200 = vmatprep.subr.mxu0 %v354_v39  ;;  %1217 = vmatprep.subr.mxu1 %v541_v48 }
  0x50   :  { %1201 = vmatpush3.msra.mxu0 %v354_v39  ;;  %1218 = vmatpush3.msra.mxu1 %v541_v48  ;;  %v522_v48 = vld [vmem:[#allocation3 + $0x18] sm:$0xff] }
  0x51   :  { %1202 = vmatprep.subr.mxu0 %v353_v40  ;;  %1219 = vmatprep.subr.mxu1 %v540_v49 }
  0x52   :  { %1203 = vmatpush3.msra.mxu0 %v353_v40  ;;  %1220 = vmatpush3.msra.mxu1 %v540_v49 }
  0x53   :  { %1204 = vmatprep.subr.mxu0 %v352_v41  ;;  %1221 = vmatprep.subr.mxu1 %v539_v50 }
  0x54   :  { %1205 = vmatpush3.msra.mxu0 %v352_v41  ;;  %1222 = vmatpush3.msra.mxu1 %v539_v50 }
  0x55   :  { %1207 = vmatmul.mubr.msk.f32.vlgmr.msra.gmra.mxu0 %vm87_vm1, %v346_v42  ;;  %1223 = vmatprep.subr.mxu1 %v538_v51 }
  0x56   :  { %1209 = vmatprep.mubr.msk.f32.mxu0 %vm87_vm1, %v347_v43  ;;  %1256 = vmatprep.subr.mxu0 %v519_v52 }
  0x57   :  { %1224 = vmatpush3.msra.mxu1 %v538_v51  ;;  %1257 = vmatpush3.msra.mxu0 %v519_v52  ;;  %v750_v51 = vld [vmem:[#allocation9 + $0x170] sm:$0xff] }
  0x58   :  { %1225 = vmatprep.subr.mxu1 %v537_v54  ;;  %1258 = vmatprep.subr.mxu0 %v518_v53 }
  0x59   :  { %1210 = vmatmul.mubr.msk.f32.gmra.mxu0 %vm87_vm1, %v348_v44  ;;  %1226 = vmatpush3.msra.mxu1 %v537_v54 }
  0x5a   :  { %1212 = vmatprep.mubr.msk.f32.mxu0 %vm87_vm1, %v349_v45  ;;  %1259 = vmatpush3.msra.mxu0 %v518_v53 }
  0x5b   :  { %1227 = vmatprep.subr.mxu1 %v536_v56  ;;  %1260 = vmatprep.subr.mxu0 %v517_v55 }
  0x5c   :  { %1228 = vmatpush3.msra.mxu1 %v536_v56  ;;  %1261 = vmatpush3.msra.mxu0 %v517_v55  ;;  %v749_v55 = vld [vmem:[#allocation9 + $0x168] sm:$0xff]  ;;  %v523_v56 = vld [vmem:[#allocation3 + $0x20] sm:$0xff] }
  0x5d   :  { %1213 = vmatmul.mubr.msk.f32.gmra.mxu0 %vm87_vm1, %v350_v46  ;;  %1229 = vmatprep.subr.mxu1 %v535_v58 }
  0x5e   :  { %1262 = vmatprep.subr.mxu0 %v516_v57  ;;  %1230 = vmatpush3.msra.mxu1 %v535_v58 }
  0x5f   :  { %1263 = vmatpush3.msra.mxu0 %v516_v57  ;;  %1231 = vmatprep.subr.mxu1 %v534_v59 }
  0x60   :  { %1264 = vmatprep.subr.mxu0 %v515_v60  ;;  %1232 = vmatpush3.msra.mxu1 %v534_v59  ;;  %v748_v59 = vld [vmem:[#allocation9 + $0x160] sm:$0xff] }
  0x61   :  { %1265 = vmatpush3.msra.mxu0 %v515_v60  ;;  %1233 = vmatprep.subr.mxu1 %v533_v61 }
  0x62   :  { %1266 = vmatprep.subr.mxu0 %v514_v62  ;;  %1234 = vmatpush3.msra.mxu1 %v533_v61 }
  0x63   :  { %1267 = vmatpush3.msra.mxu0 %v514_v62  ;;  %1235 = vmatprep.subr.mxu1 %v532_v0 }
  0x64   :  { %1268 = vmatprep.subr.mxu0 %v513_v63  ;;  %1236 = vmatpush3.msra.mxu1 %v532_v0 }
  0x65   :  { %1269 = vmatpush3.msra.mxu0 %v513_v63  ;;  %1237 = vmatprep.subr.mxu1 %v531_v1  ;;  %v747_v63 = vld [vmem:[#allocation9 + $0x158] sm:$0xff] }
  0x66   :  { %1270 = vmatprep.subr.mxu0 %v512_v2  ;;  %1238 = vmatpush3.msra.mxu1 %v531_v1  ;;  %v501_v1 = vld [vmem:[#allocation3 + $0x1f] sm:$0xff] }
  0x67   :  { %1271 = vmatpush3.msra.mxu0 %v512_v2  ;;  %1239 = vmatprep.subr.mxu1 %v530_v3  ;;  %v746_v2 = vld [vmem:[#allocation9 + $0x150] sm:$0xff] }
  0x68   :  { %1272 = vmatprep.subr.mxu0 %v511_v4  ;;  %1240 = vmatpush3.msra.mxu1 %v530_v3 }
  0x69   :  { %1273 = vmatpush3.msra.mxu0 %v511_v4  ;;  %1241 = vmatprep.subr.mxu1 %v529_v5  ;;  %v865_v4 = vld [vmem:[#allocation10 + $0x30] sm:$0xff] }
  0x6a   :  { %1274 = vmatprep.subr.mxu0 %v510_v6  ;;  %1242 = vmatpush3.msra.mxu1 %v529_v5  ;;  %v745_v5 = vld [vmem:[#allocation9 + $0x148] sm:$0xff] }
  0x6b   :  { %1275 = vmatpush3.msra.mxu0 %v510_v6  ;;  %1243 = vmatprep.subr.mxu1 %v528_v7  ;;  %v744_v6 = vld [vmem:[#allocation9 + $0x140] sm:$0xff] }
  0x6c   :  { %1276 = vmatprep.subr.mxu0 %v509_v8  ;;  %1244 = vmatpush3.msra.mxu1 %v528_v7 }
  0x6d   :  { %1277 = vmatpush3.msra.mxu0 %v509_v8  ;;  %1245 = vmatprep.subr.mxu1 %v527_v11 }
  0x6e   :  { %1278 = vmatprep.subr.mxu0 %v508_v12  ;;  %1246 = vmatpush3.msra.mxu1 %v527_v11  ;;  %v864_v11 = vld [vmem:[#allocation10 + $0x28] sm:$0xff] }
  0x6f   :  { %1279 = vmatpush3.msra.mxu0 %v508_v12  ;;  %1297 = vmatprep.subr.mxu1 %v751_v13  ;;  %v743_v12 = vld [vmem:[#allocation9 + $0x138] sm:$0xff] }
  0x70   :  { %1280 = vmatprep.subr.mxu0 %v507_v14 }
  0x71   :  { %1281 = vmatpush3.msra.mxu0 %v507_v14  ;;  %v742_v14 = vld [vmem:[#allocation9 + $0x130] sm:$0xff] }
  0x72   :  { %1282 = vmatprep.subr.mxu0 %v506_v17 }
  0x73   :  { %1283 = vmatpush3.msra.mxu0 %v506_v17  ;;  %v862_v17 = vld [vmem:[#allocation10 + $0x18] sm:$0xff] }
  0x74   :  { %1284 = vmatprep.subr.mxu0 %v505_v18 }
  0x75   :  { %1285 = vmatpush3.msra.mxu0 %v505_v18  ;;  %v741_v18 = vld [vmem:[#allocation9 + $0x128] sm:$0xff] }
  0x76   :  { %1286 = vmatprep.subr.mxu0 %v504_v19 }
  0x77   :  { %1287 = vmatpush3.msra.mxu0 %v504_v19  ;;  %v861_v19 = vld [vmem:[#allocation10 + $0x10] sm:$0xff] }
  0x78   :  { %1338 = vmatprep.subr.mxu0 %v1577_v20 }
 0x103   :  { %v1158_v21 = vpop.f32.mrf.mxu0 }
 0x104   :  { %v1183_v22 = vpop.f32.mrf.mxu1 }
 0x105   :  { %v207_v24 = vpop.f32.mrf.mxu0  ;;  %v324_v31 = vadd.f32 %v1183_v22, %v1158_v21  ;;  %v860_v21 = vld [vmem:[#allocation10 + $0x8] sm:$0xff]  ;;  %v739_v22 = vld [vmem:[#allocation9 + $0x118] sm:$0xff] }
 0x106   :  { %v318_v23 = vpop.f32.mrf.mxu1 }
 0x107   :  { %v319_v34 = vadd.f32 %v318_v23, %v207_v24  ;;  %v859_v23 = vld [vmem:[#allocation10] sm:$0xff]  ;;  %v738_v24 = vld [vmem:[#allocation9 + $0x110] sm:$0xff] }
 0x108   :  { %v1186_v25 = vpop.f32.mrf.mxu1 }
 0x109   :  { %v1161_v26 = vpop.f32.mrf.mxu0  ;;  %v737_v25 = vld [vmem:[#allocation9 + $0x108] sm:$0xff] }
 0x10a   :  { %v328_v27 = vpop.f32.mrf.mxu1  ;;  %v736_v26 = vld [vmem:[#allocation9 + $0x100] sm:$0xff] }
 0x10b   :  { %v217_v28 = vpop.f32.mrf.mxu0  ;;  %v731_v27 = vld [vmem:[#allocation3 + $0x19] sm:$0xff] }
 0x10c   :  { %v1189_v36 = vpop.f32.mrf.mxu1 }
 0x10d   :  { %v1164_v29 = vpop.f32.mrf.mxu0 }
 0x10e   :  { %v336_v43 = vpop.f32.mrf.mxu1  ;;  %v342_v45 = vadd.f32 %v1189_v36, %v1164_v29 }
 0x10f   :  { %v225_v30 = vpop.f32.mrf.mxu0 }
 0x110   :  { %v337_v49 = vadd.f32 %v336_v43, %v225_v30 }
 0x115   :  { %v1208_v33 = vpop.f32.mrf.mxu0 }
 0x116   :  { %v472_v35 = vadd.f32 %v1208_v33, %v324_v31 }
 0x117   :  { %v444_v37 = vpop.f32.mrf.mxu0 }
 0x118   :  { %v482_v38 = vadd.f32 %v1014_v32, %v472_v35  ;;  %v471_v39 = vadd.f32 %v444_v37, %v319_v34 }
 0x119   :  { %v1211_v40 = vpop.f32.mrf.mxu0 }
 0x11a   :  { %v486_v41 = vmax.f32 %v482_v38, 0.0  ;;  %v481_v42 = vadd.f32 %v1014_v32, %v471_v39 }
 0x11b   :  { %v454_v44 = vpop.f32.mrf.mxu0 }
 0x11c   :  { %493 = vst [vmem:[#allocation3 + $0x10] sm:$0xff] %v486_v41  ;;  %v485_v46 = vmax.f32 %v481_v42, 0.0  ;;  %v1015_v42 = vld [vmem:[%s1605_s4] ss:$0 sm:$0xff]  ;;  %s1483_s4 = smov [#allocation12]  }
 0x11d   :  { %v1214_v47 = vpop.f32.mrf.mxu0  ;;  %s982_s18 = sshll.u32 %s1483_s4, 4  ;;  %s983_s18 = int_to_ptr.vmem [resolvable:$true] %s982_s18 }
 0x11e   :  { %492 = vst [vmem:[#allocation3 + $0x8] sm:$0xff] %v485_v46  ;;  %v474_v50 = vadd.f32 %v1214_v47, %v342_v45  ;;  %1247 = vmatprep.mubr.f32.mxu1 %v485_v46  ;;  %s1448_s19 = scalar_lea.vmem %s983_s18, 512  ;;  %p1453_p7 = scmp.lt.s32.totalorder %s983_s18, %s983_s18 }
 0x11f   :  { %v462_v52 = vpop.f32.mrf.mxu0  ;;  %1248 = vmatmul.mubr.f32.vlgmr.msra.gmra.mxu1 %v486_v41  ;;  %p1449_p6 = scmp.ne.s32.totalorder %s983_s18, %s1448_s19  ;;  %p1454_p8 = scmp.lt.s32.totalorder %s1448_s19, %s1448_s19 }
 0x120   :  { %v484_v53 = vadd.f32 %v1014_v32, %v474_v50  ;;  %v473_v54 = vadd.f32 %v462_v52, %v337_v49  ;;  %1298 = vmatpush3.msra.mxu1 %v751_v13  ;;  %1250 = vmatprep.mubr.f32.mxu1 %v522_v48  ;;  %v863_v13 = vld [vmem:[#allocation10 + $0x20] sm:$0xff] }
 0x121   :  { %1299 = vmatprep.subr.mxu1 %v750_v51  ;;  %p1455_p9 = por %p1454_p8, %p1453_p7 }
 0x122   :  { %v488_v57 = vmax.f32 %v484_v53, 0.0  ;;  %v483_v58 = vadd.f32 %v1014_v32, %v473_v54  ;;  %1300 = vmatpush3.msra.mxu1 %v750_v51 }
 0x123   :  { %1301 = vmatprep.subr.mxu1 %v749_v55  ;;  %1251 = vmatmul.mubr.f32.gmra.mxu1 %v523_v56  ;;  %v500_v0 = vld [vmem:[#allocation3 + $0x17] sm:$0xff]  ;;  %p1456_p10 = pnand %p1455_p9, %p1449_p6 }
 0x124   :  { %497 = vst [vmem:[#allocation3 + $0x30] sm:$0xff] %v488_v57  ;;  %v487_v60 = vmax.f32 %v483_v58, 0.0  ;;  %1302 = vmatpush3.msra.mxu1 %v749_v55  ;;  %v730_v28 = vld [vmem:[#allocation3 + $0x11] sm:$0xff] }
 0x125   :  { %v498_v61 = vld [vmem:[#allocation3 + $0x7] sm:$0xff]  ;;  %v499_v62 = vld [vmem:[#allocation3 + $0xf] sm:$0xff]  ;;  %1303 = vmatprep.subr.mxu1 %v748_v59 }
 0x126   :  { %496 = vst [vmem:[#allocation3 + $0x28] sm:$0xff] %v487_v60  ;;  %1288 = vmatprep.mubr.f32.mxu0 %v498_v61  ;;  %1304 = vmatpush3.msra.mxu1 %v748_v59  ;;  %v729_v3 = vld [vmem:[#allocation3 + $0x9] sm:$0xff] }
 0x127   :  { %1289 = vmatmul.mubr.f32.vlgmr.msra.gmra.mxu0 %v499_v62  ;;  %1253 = vmatprep.mubr.f32.mxu1 %v487_v60 }
 0x128   :  { %1291 = vmatprep.mubr.f32.mxu0 %v500_v0  ;;  %1305 = vmatprep.subr.mxu1 %v747_v63 }
 0x129   :  { %1254 = vmatmul.mubr.f32.gmra.mxu1 %v488_v57  ;;  %1339 = vmatpush3.msra.mxu0 %v1577_v20  ;;  %v740_v20 = vld [vmem:[#allocation9 + $0x120] sm:$0xff] }
 0x12a   :  { %1306 = vmatpush3.msra.mxu1 %v747_v63  ;;  %1329 = vmatprep.mubr.f32.mxu1 %v729_v3 }
 0x12b   :  { %1292 = vmatmul.mubr.f32.gmra.mxu0 %v501_v1  ;;  %1307 = vmatprep.subr.mxu1 %v746_v2  ;;  %v734_v30 = vld [vmem:[#allocation3 + $0x31] sm:$0xff] }
 0x12c   :  { %1308 = vmatpush3.msra.mxu1 %v746_v2  ;;  %1340 = vmatprep.subr.mxu0 %v865_v4 }
 0x12d   :  { %v502_v7 = vld [vmem:[#allocation3 + $0x27] sm:$0xff]  ;;  %v503_v8 = vld [vmem:[#allocation3 + $0x2f] sm:$0xff]  ;;  %1309 = vmatprep.subr.mxu1 %v745_v5  ;;  %1341 = vmatpush3.msra.mxu0 %v865_v4 }
 0x12e   :  { %1294 = vmatprep.mubr.f32.mxu0 %v502_v7  ;;  %1310 = vmatpush3.msra.mxu1 %v745_v5  ;;  %v732_v29 = vld [vmem:[#allocation3 + $0x21] sm:$0xff] }
 0x12f   :  { %1295 = vmatmul.mubr.f32.gmra.mxu0 %v503_v8  ;;  %1311 = vmatprep.subr.mxu1 %v744_v6 }
 0x130   :  { %1312 = vmatpush3.msra.mxu1 %v744_v6  ;;  %1342 = vmatprep.subr.mxu0 %v864_v11 }
 0x131   :  { %1313 = vmatprep.subr.mxu1 %v743_v12  ;;  %1343 = vmatpush3.msra.mxu0 %v864_v11 }
 0x132   :  { %1314 = vmatpush3.msra.mxu1 %v743_v12  ;;  %1344 = vmatprep.subr.mxu0 %v863_v13 }
 0x133   :  { %1315 = vmatprep.subr.mxu1 %v742_v14  ;;  %1345 = vmatpush3.msra.mxu0 %v863_v13 }
 0x134   :  { %1316 = vmatpush3.msra.mxu1 %v742_v14  ;;  %1346 = vmatprep.subr.mxu0 %v862_v17 }
 0x135   :  { %1317 = vmatprep.subr.mxu1 %v741_v18  ;;  %1347 = vmatpush3.msra.mxu0 %v862_v17 }
 0x136   :  { %1318 = vmatpush3.msra.mxu1 %v741_v18  ;;  %1348 = vmatprep.subr.mxu0 %v861_v19 }
 0x137   :  { %1319 = vmatprep.subr.mxu1 %v740_v20  ;;  %1349 = vmatpush3.msra.mxu0 %v861_v19 }
 0x138   :  { %1320 = vmatpush3.msra.mxu1 %v740_v20  ;;  %1350 = vmatprep.subr.mxu0 %v860_v21 }
 0x139   :  { %1321 = vmatprep.subr.mxu1 %v739_v22  ;;  %1351 = vmatpush3.msra.mxu0 %v860_v21 }
 0x13a   :  { %1322 = vmatpush3.msra.mxu1 %v739_v22  ;;  %1352 = vmatprep.subr.mxu0 %v859_v23 }
 0x13b   :  { %1323 = vmatprep.subr.mxu1 %v738_v24  ;;  %1353 = vmatpush3.msra.mxu0 %v859_v23 }
 0x13c   :  { %1324 = vmatpush3.msra.mxu1 %v738_v24  ;;  %1354 = vmatprep.mubr.msk.f32.mxu0 %vm87_vm1, %v1543_v9  ;;  %v733_v9 = vld [vmem:[#allocation3 + $0x29] sm:$0xff] }
 0x13d   :  { %1325 = vmatprep.subr.mxu1 %v737_v25  ;;  %1355 = vmatmul.mubr.msk.f32.vlgmr.msra.gmra.mxu0 %vm87_vm1, %v1545_v10 }
 0x13e   :  { %1326 = vmatpush3.msra.mxu1 %v737_v25  ;;  %1357 = vmatprep.mubr.msk.f32.mxu0 %vm87_vm1, %v1551_v15 }
 0x13f   :  { %1327 = vmatprep.subr.mxu1 %v736_v26 }
 0x140   :  { %1328 = vmatpush3.msra.mxu1 %v736_v26 }
 0x141   :  { %1330 = vmatmul.mubr.f32.vlgmr.msra.gmra.mxu1 %v730_v28  ;;  %1358 = vmatmul.mubr.msk.f32.gmra.mxu0 %vm87_vm1, %v1555_v16 }
 0x142   :  { %1332 = vmatprep.mubr.f32.mxu1 %v731_v27 }
 0x145   :  { %1333 = vmatmul.mubr.f32.gmra.mxu1 %v732_v29 }
 0x146   :  { %1335 = vmatprep.mubr.f32.mxu1 %v733_v9 }
 0x149   :  { %1336 = vmatmul.mubr.f32.gmra.mxu1 %v734_v30 }
 0x1df   :  { %v1249_v10 = vpop.f32.mrf.mxu1 }
 0x1e1   :  { %v609_v31 = vpop.f32.mrf.mxu1 }
 0x1e3   :  { %v1252_v32 = vpop.f32.mrf.mxu1 }
 0x1e5   :  { %v619_v33 = vpop.f32.mrf.mxu1 }
 0x1e7   :  { %v1290_v15 = vpop.f32.mrf.mxu0 }
 0x1e8   :  { %v708_v16 = vadd.f32 %v1290_v15, %v1249_v10 }
 0x1e9   :  { %v702_v34 = vpop.f32.mrf.mxu0  ;;  %v1255_v37 = vpop.f32.mrf.mxu1 }
 0x1ea   :  { %v703_v44 = vadd.f32 %v702_v34, %v609_v31 }
 0x1eb   :  { %v1293_v35 = vpop.f32.mrf.mxu0  ;;  %v627_v39 = vpop.f32.mrf.mxu1 }
 0x1ed   :  { %v712_v36 = vpop.f32.mrf.mxu0 }
 0x1ef   :  { %v1296_v38 = vpop.f32.mrf.mxu0 }
 0x1f0   :  { %v726_v54 = vadd.f32 %v1296_v38, %v1255_v37 }
 0x1f1   :  { %v720_v40 = vpop.f32.mrf.mxu0 }
 0x1f2   :  { %v721_v58 = vadd.f32 %v720_v40, %v627_v39 }
 0x1fd   :  { %v1356_v43 = vpop.f32.mrf.mxu0 }
 0x1ff   :  { %v945_v50 = vpop.f32.mrf.mxu0 }
 0x201   :  { %v1331_v41 = vpop.f32.mrf.mxu1  ;;  %v1359_v62 = vpop.f32.mrf.mxu0 }
 0x202   :  { %v846_v45 = vadd.f32 %v1331_v41, %v708_v16 }
 0x203   :  { %v818_v46 = vpop.f32.mrf.mxu1  ;;  %v955_v3 = vpop.f32.mrf.mxu0 }
 0x204   :  { %v845_v47 = vadd.f32 %v818_v46, %v703_v44  ;;  %v856_v48 = vadd.f32 %v1015_v42, %v846_v45 }
 0x205   :  { %v1334_v49 = vpop.f32.mrf.mxu1 }
 0x206   :  { %v965_v51 = vadd.f32 %v1356_v43, %v856_v48  ;;  %v855_v52 = vadd.f32 %v1015_v42, %v845_v47 }
 0x207   :  { %v828_v53 = vpop.f32.mrf.mxu1 }
 0x208   :  { %v967_v55 = vmax.f32 %v965_v51, 0.0  ;;  %v964_v56 = vadd.f32 %v945_v50, %v855_v52 }
 0x209   :  { %v1337_v57 = vpop.f32.mrf.mxu1 }
 0x20a   :  { %969 = vst [vmem:[#allocation12 + $0x8] sm:$0xff] %v967_v55  ;;  %v966_v59 = vmax.f32 %v964_v56, 0.0  ;;  %v848_v60 = vadd.f32 %v1337_v57, %v726_v54 }
 0x20b   :  { %v836_v61 = vpop.f32.mrf.mxu1 }
 0x20c   :  { %968 = vst [vmem:[#allocation12] sm:$0xff] %v966_v59  ;;  %v847_v63 = vadd.f32 %v836_v61, %v721_v58  ;;  %v858_v0 = vadd.f32 %v1015_v42, %v848_v60 }
 0x20e   :  { %v971_v1 = vadd.f32 %v1359_v62, %v858_v0  ;;  %v857_v2 = vadd.f32 %v1015_v42, %v847_v63 }
 0x210   :  { %v973_v4 = vmax.f32 %v971_v1, 0.0  ;;  %v970_v5 = vadd.f32 %v955_v3, %v857_v2 }
 0x212   :  { %976 = vst [vmem:[#allocation12 + $0x18] sm:$0xff] %v973_v4  ;;  %v972_v6 = vmax.f32 %v970_v5, 0.0 }
 0x214   :  { %975 = vst [vmem:[#allocation12 + $0x10] sm:$0xff] %v972_v6 }
 0x215   :  { %1459 = shalt.err (!%p1456_p10)
}
 0x216   :  { %988 = dma.vmem_to_hbm [thread:$0]  %s983_s18, 512, %s1607_s6, [#allocation6], %s1478_s26, %s1478_s26, %s1479_s27  }
 0x217   :  { %1474 = dma.done.wait [#allocation6], 512  }
 0x218   :  { %1475 = vsyncadd [#allocation6], 4294966784 }
 0x219   :  { %992 = vsyncpa [#allocation5], 1 }
 0x21a   :  { %993 = vsyncpa [#allocation8], 1 }
 0x21b   :  { %994 = vsyncpa [#allocation11], 1 }
 0x21c   :  { %995 = vsyncpa [#allocation6], 1 }

</bundles_post_ra>
